<compile_context>
chip_gen: v5e
topology: v5e:2x2
jax: 0.10.0
libtpu: 0.0.40
codegen_flags: <defaults>
</compile_context>

<pallas_src>
import functools

import jax
import jax.numpy as jnp
from jax import lax
from jax.experimental import pallas as pl
from jax.experimental.pallas import tpu as pltpu


def _pick_query_tile(n, target=128):
    """Largest 8-aligned divisor of n that is <= target (or n itself if small)."""
    if n <= target:
        return n
    for t in range(target, 7, -1):
        if t % 8 == 0 and n % t == 0:
            return t
    return n  # fall back: single query tile


# ----------------------------------------------------------------------------
# Pallas kernel: all-heads attention weights for one (batch, query-tile) step
# ----------------------------------------------------------------------------
def _mh_attn_weights_kernel(x_q_ref, x_kv_ref, wq_ref, wk_ref, out_ref, k_scratch,
                            *, n_heads, d_head):
    # x_q_ref  : (1, Tq, D)   query rows of this tile
    # x_kv_ref : (1, N,  D)   full sequence (block index constant in qi -> resident)
    # wq_ref   : (D, H*Dh)    bf16, softmax scale pre-folded, resident in VMEM
    # wk_ref   : (D, H*Dh)    bf16, resident in VMEM
    # out_ref  : (1, H, Tq, N)
    # k_scratch: (H, N, Dh)   bf16 VMEM scratch, recomputed once per batch element
    qi = pl.program_id(1)
    n_kv = x_kv_ref.shape[1]
    tq = x_q_ref.shape[1]

    # Key projection once per batch element (qi axis is "arbitrary"/sequential).
    @pl.when(qi == 0)
    def _():
        k_all = jnp.dot(x_kv_ref[0].astype(jnp.bfloat16), wk_ref[...],
                        preferred_element_type=jnp.float32)           # (N, H*Dh)
        k_scratch[...] = (k_all.reshape(n_kv, n_heads, d_head)
                          .transpose(1, 0, 2)
                          .astype(jnp.bfloat16))                      # (H, N, Dh)

    # Fused all-head query projection; lane dim = H*Dh (lane-dense MXU shape).
    # 1/sqrt(Dh) is already folded into wq_ref by the wrapper.
    q_all = jnp.dot(x_q_ref[0].astype(jnp.bfloat16), wq_ref[...],
                    preferred_element_type=jnp.float32)               # (Tq, H*Dh)
    q = (q_all.reshape(tq, n_heads, d_head)
         .transpose(1, 0, 2)
         .astype(jnp.bfloat16))                                       # (H, Tq, Dh)

    # Batched QK^T: contract over Dh, batch over heads -- no explicit k.T.
    scores = lax.dot_general(
        q, k_scratch[...],
        dimension_numbers=(((2,), (2,)), ((0,), (0,))),
        preferred_element_type=jnp.float32)                           # (H, Tq, N)

    # Numerically-stable softmax in f32.  Exact division (NOT the approximate
    # EUP reciprocal): rows must sum to 1 to high precision because the
    # DCdetector downstream loss is a KL divergence between series and prior.
    m = jnp.max(scores, axis=-1, keepdims=True)
    e = jnp.exp(scores - m)
    denom = jnp.sum(e, axis=-1, keepdims=True)
    out_ref[0] = (e / denom).astype(out_ref.dtype)


def attention_weights(x, wq, wk, *, out_dtype=jnp.bfloat16, tq_target=128):
    """softmax((x Wq)(x Wk)^T / sqrt(Dh)) per head, via a Pallas TPU kernel.

    x : (B, N, D) float32
    wq, wk : (H, D, Dh) float32
    returns (B, H, N, N) in `out_dtype` (softmax math stays f32 in-kernel)
    """
    B, N, D = x.shape
    H, _, Dh = wq.shape
    scale = 1.0 / float(Dh) ** 0.5

    # (H, D, Dh) -> (D, H*Dh): all heads share one lane-dense projection slab.
    # Fold the softmax scale into Wq here (amortized over all grid steps) and
    # cast to bf16 so the MXU runs its native fast path (f32 accumulation).
    wq_all = (jnp.transpose(wq, (1, 0, 2)).reshape(D, H * Dh) * scale).astype(jnp.bfloat16)
    wk_all = jnp.transpose(wk, (1, 0, 2)).reshape(D, H * Dh).astype(jnp.bfloat16)

    tq = _pick_query_tile(N, tq_target)
    num_q_tiles = N // tq

    kernel = functools.partial(_mh_attn_weights_kernel, n_heads=H, d_head=Dh)

    out_itemsize = jnp.dtype(out_dtype).itemsize
    cost = pl.CostEstimate(
        flops=int(4 * B * N * D * (H * Dh) + 2 * B * H * N * N * Dh),
        transcendentals=int(B * H * N * N),
        bytes_accessed=int(B * N * D * 4 + 2 * D * H * Dh * 2
                           + B * H * N * N * out_itemsize),
    )

    # NOTE: output last dim is N (== full array dim, so the (8,128) rule is
    # satisfied).  Lane-padding N up to 128 was considered but the wrapper-side
    # slice-out copy would re-spend the saved store bandwidth at DCdetector's
    # small window/patch sizes.
    return pl.pallas_call(
        kernel,
        out_shape=jax.ShapeDtypeStruct((B, H, N, N), out_dtype),
        grid=(B, num_q_tiles),
        in_specs=[
            pl.BlockSpec((1, tq, D), lambda b, qi: (b, qi, 0)),   # query rows
            pl.BlockSpec((1, N, D), lambda b, qi: (b, 0, 0)),     # full seq (resident)
            pl.BlockSpec((D, H * Dh), lambda b, qi: (0, 0)),      # Wq slab (resident)
            pl.BlockSpec((D, H * Dh), lambda b, qi: (0, 0)),      # Wk slab (resident)
        ],
        out_specs=pl.BlockSpec((1, H, tq, N), lambda b, qi: (b, 0, qi, 0)),
        scratch_shapes=[pltpu.VMEM((H, N, Dh), jnp.bfloat16)],
        compiler_params=pltpu.CompilerParams(
            dimension_semantics=("parallel", "arbitrary"),
            vmem_limit_bytes=48 << 20),
        cost_estimate=cost,
    )(x, x, wq_all, wk_all)


# ----------------------------------------------------------------------------
# Pure-JAX reference (for validation)
# ----------------------------------------------------------------------------
def attention_weights_ref(x, wq, wk):
    q = jnp.einsum("bnd,hde->bhne", x, wq)
    k = jnp.einsum("bnd,hde->bhne", x, wk)
    scores = jnp.einsum("bhne,bhme->bhnm", q, k) / jnp.sqrt(
        jnp.float32(wq.shape[-1]))
    return jax.nn.softmax(scores, axis=-1)


# ----------------------------------------------------------------------------
# Synthetic attention layer + Encoder (mirrors the PyTorch Encoder.forward)
# ----------------------------------------------------------------------------
def init_attn_layer_params(key, d_model, n_heads):
    """Deterministic per-layer params: separate Q/K projections per branch."""
    dh = d_model // n_heads
    ks = jax.random.split(key, 4)
    shape = (n_heads, d_model, dh)
    std = 1.0 / jnp.sqrt(jnp.float32(d_model))
    return {
        "wq_size": jax.random.normal(ks[0], shape, jnp.float32) * std,
        "wk_size": jax.random.normal(ks[1], shape, jnp.float32) * std,
        "wq_num":  jax.random.normal(ks[2], shape, jnp.float32) * std,
        "wk_num":  jax.random.normal(ks[3], shape, jnp.float32) * std,
    }


def attn_layer_forward(params, x_patch_size, x_patch_num, patch_index,
                       patch_size_mask=None, patch_num_mask=None):
    """Dual-branch attention layer: returns (series, prior) attention maps."""
    # TODO(synk): optional attention masks are not supported (module default is None).
    del patch_index, patch_size_mask, patch_num_mask
    series = attention_weights(x_patch_size, params["wq_size"], params["wk_size"])
    prior = attention_weights(x_patch_num, params["wq_num"], params["wk_num"])
    return series, prior


def encoder_forward(layer_params_list, x_patch_size, x_patch_num, patch_index,
                    patch_size_mask=None, patch_num_mask=None):
    """Exact analogue of Encoder.forward: loop layers, collect (series, prior)."""
    # TODO(synk): norm_layer is None in the reference config, so no norm is applied.
    # TODO(synk): fusing all layers into one pallas_call per branch
    #             (grid=(B, L, N//Tq) with an (L, D, H*Dh) weight slab) would
    #             remove L-1 launches / x re-DMAs; kept per-layer for clarity.
    series_list = []
    prior_list = []
    for params in layer_params_list:
        series, prior = attn_layer_forward(
            params, x_patch_size, x_patch_num, patch_index,
            patch_size_mask, patch_num_mask)
        series_list.append(series)
        prior_list.append(prior)
    return series_list, prior_list


# ----------------------------------------------------------------------------
# Demo
# ----------------------------------------------------------------------------
if __name__ == "__main__":
    key = jax.random.PRNGKey(0)

    B = 2            # batch
    N_SIZE = 16      # tokens in patch-size branch
    N_NUM = 8        # tokens in patch-num branch
    D_MODEL = 32     # hidden
    N_HEADS = 4
    N_LAYERS = 2

    k_x1, k_x2, k_layers = jax.random.split(key, 3)
    x_patch_size = jax.random.normal(k_x1, (B, N_SIZE, D_MODEL), jnp.float32)
    x_patch_num = jax.random.normal(k_x2, (B, N_NUM, D_MODEL), jnp.float32)
    patch_index = 0  # passed through, unused by this synthetic attn layer

    layer_keys = jax.random.split(k_layers, N_LAYERS)
    layer_params = [init_attn_layer_params(k, D_MODEL, N_HEADS) for k in layer_keys]

    series_list, prior_list = encoder_forward(
        layer_params, x_patch_size, x_patch_num, patch_index)

    for params, s, p in zip(layer_params, series_list, prior_list):
        s = jax.block_until_ready(s)
        p = jax.block_until_ready(p)
        assert s.shape == (B, N_HEADS, N_SIZE, N_SIZE)
        assert p.shape == (B, N_HEADS, N_NUM, N_NUM)

        s32 = s.astype(jnp.float32)
        p32 = p.astype(jnp.float32)
        # softmax rows sum to 1 (exact division; bf16 output -> ~1e-2 tolerance)
        assert jnp.allclose(jnp.sum(s32, axis=-1), 1.0, atol=1e-2)
        assert jnp.allclose(jnp.sum(p32, axis=-1), 1.0, atol=1e-2)
        # match the pure-JAX f32 reference (bf16 MXU inputs + bf16 output)
        s_ref = attention_weights_ref(x_patch_size, params["wq_size"], params["wk_size"])
        p_ref = attention_weights_ref(x_patch_num, params["wq_num"], params["wk_num"])
        assert jnp.allclose(s32, s_ref, atol=2e-2, rtol=2e-2)
        assert jnp.allclose(p32, p_ref, atol=2e-2, rtol=2e-2)

    print("KERNEL_OK")
</pallas_src>

<mosaic_0001>
module attributes {stable_mosaic.version = 11 : i64} {
  func.func @_mh_attn_weights_kernel(%arg0: i32, %arg1: i32, %arg2: memref<1x16x32xf32, #tpu.memory_space<vmem>>, %arg3: memref<1x16x32xf32, #tpu.memory_space<vmem>>, %arg4: memref<32x32xbf16, #tpu.memory_space<vmem>>, %arg5: memref<32x32xbf16, #tpu.memory_space<vmem>>, %arg6: memref<1x4x16x16xbf16, #tpu.memory_space<vmem>>, %arg7: memref<4x16x8xbf16, #tpu.memory_space<vmem>>) attributes {dimension_semantics = [#tpu.dimension_semantics<parallel>, #tpu.dimension_semantics<arbitrary>], iteration_bounds = array<i64: 2, 1>, scalar_prefetch = 0 : i64, scratch_operands = 1 : i64, tpu.core_type = #tpu.core_type<tc>, window_params = [{transform_indices = @transform_0, window_bounds = array<i64: 1, 16, 32>}, {transform_indices = @transform_1, window_bounds = array<i64: 1, 16, 32>}, {pipeline_mode = #tpu.pipeline_mode<synchronous>, transform_indices = @transform_2, window_bounds = array<i64: 32, 32>}, {pipeline_mode = #tpu.pipeline_mode<synchronous>, transform_indices = @transform_3, window_bounds = array<i64: 32, 32>}, {transform_indices = @transform_4, window_bounds = array<i64: 1, 4, 16, 16>}]} {
    %c0_i32 = arith.constant 0 : i32
    %0 = arith.cmpi eq, %arg1, %c0_i32 : i32
    %1 = arith.extui %0 : i1 to i32
    %c0_i32_0 = arith.constant 0 : i32
    %2 = arith.cmpi ne, %1, %c0_i32_0 : i32
    scf.if %2 {
      %c0_15 = arith.constant 0 : index
      %c0_16 = arith.constant 0 : index
      %c0_17 = arith.constant 0 : index
      %26 = vector.load %arg3[%c0_15, %c0_16, %c0_17] : memref<1x16x32xf32, #tpu.memory_space<vmem>>, vector<1x16x32xf32>
      %27 = vector.shape_cast %26 : vector<1x16x32xf32> to vector<16x32xf32>
      %28 = arith.truncf %27 : vector<16x32xf32> to vector<16x32xbf16>
      %c0_18 = arith.constant 0 : index
      %c0_19 = arith.constant 0 : index
      %29 = vector.load %arg5[%c0_18, %c0_19] : memref<32x32xbf16, #tpu.memory_space<vmem>>, vector<32x32xbf16>
      %cst_20 = arith.constant dense<0.000000e+00> : vector<16x32xf32>
      %30 = tpu.matmul %28, %29, %cst_20 {dimension_numbers = #tpu.dot_dimension_numbers<[1], [0], [0], [1], [0, 0, 1, 1], [], []>} : vector<16x32xbf16>, vector<32x32xbf16>, vector<16x32xf32> -> vector<16x32xf32>
      %31 = vector.shape_cast %30 : vector<16x32xf32> to vector<16x4x8xf32>
      %32 = tpu.transpose %31, [1, 0, 2] : vector<16x4x8xf32> -> vector<4x16x8xf32>
      %33 = arith.truncf %32 : vector<4x16x8xf32> to vector<4x16x8xbf16>
      %c0_21 = arith.constant 0 : index
      %c0_22 = arith.constant 0 : index
      %c0_23 = arith.constant 0 : index
      %34 = vector.load %arg7[%c0_21, %c0_22, %c0_23] : memref<4x16x8xbf16, #tpu.memory_space<vmem>>, vector<4x16x8xbf16>
      tpu.vector_store %arg7[%c0_21, %c0_22, %c0_23], %33 {strides = array<i32>} : memref<4x16x8xbf16, #tpu.memory_space<vmem>>, vector<4x16x8xbf16>,
    } else {
    }
    %c0 = arith.constant 0 : index
    %c0_1 = arith.constant 0 : index
    %c0_2 = arith.constant 0 : index
    %3 = vector.load %arg2[%c0, %c0_1, %c0_2] : memref<1x16x32xf32, #tpu.memory_space<vmem>>, vector<1x16x32xf32>
    %4 = vector.shape_cast %3 : vector<1x16x32xf32> to vector<16x32xf32>
    %5 = arith.truncf %4 : vector<16x32xf32> to vector<16x32xbf16>
    %c0_3 = arith.constant 0 : index
    %c0_4 = arith.constant 0 : index
    %6 = vector.load %arg4[%c0_3, %c0_4] : memref<32x32xbf16, #tpu.memory_space<vmem>>, vector<32x32xbf16>
    %cst = arith.constant dense<0.000000e+00> : vector<16x32xf32>
    %7 = tpu.matmul %5, %6, %cst {dimension_numbers = #tpu.dot_dimension_numbers<[1], [0], [0], [1], [0, 0, 1, 1], [], []>} : vector<16x32xbf16>, vector<32x32xbf16>, vector<16x32xf32> -> vector<16x32xf32>
    %8 = vector.shape_cast %7 : vector<16x32xf32> to vector<16x4x8xf32>
    %9 = tpu.transpose %8, [1, 0, 2] : vector<16x4x8xf32> -> vector<4x16x8xf32>
    %10 = arith.truncf %9 : vector<4x16x8xf32> to vector<4x16x8xbf16>
    %c0_5 = arith.constant 0 : index
    %c0_6 = arith.constant 0 : index
    %c0_7 = arith.constant 0 : index
    %11 = vector.load %arg7[%c0_5, %c0_6, %c0_7] : memref<4x16x8xbf16, #tpu.memory_space<vmem>>, vector<4x16x8xbf16>
    %cst_8 = arith.constant dense<0.000000e+00> : vector<4x16x16xf32>
    %12 = tpu.matmul %10, %11, %cst_8 {dimension_numbers = #tpu.dot_dimension_numbers<[2], [2], [1], [1], [0, 0, 0, 1, 1, 1], [0], [0]>} : vector<4x16x8xbf16>, vector<4x16x8xbf16>, vector<4x16x16xf32> -> vector<4x16x16xf32>
    %cst_9 = arith.constant dense<0xFF800000> : vector<4x16xf32>
    %13 = vector.multi_reduction <maximumf>, %12, %cst_9 [2] : vector<4x16x16xf32> to vector<4x16xf32>
    %14 = vector.shape_cast %13 : vector<4x16xf32> to vector<4x16x1xf32>
    %15 = vector.broadcast %14 : vector<4x16x1xf32> to vector<4x16x16xf32>
    %16 = arith.subf %12, %15 : vector<4x16x16xf32>
    %17 = math.exp %16 : vector<4x16x16xf32>
    %cst_10 = arith.constant dense<0.000000e+00> : vector<4x16xf32>
    %18 = vector.multi_reduction <add>, %17, %cst_10 [2] : vector<4x16x16xf32> to vector<4x16xf32>
    %19 = vector.shape_cast %18 : vector<4x16xf32> to vector<4x16x1xf32>
    %20 = vector.broadcast %19 : vector<4x16x1xf32> to vector<4x16x16xf32>
    %21 = arith.divf %17, %20 : vector<4x16x16xf32>
    %22 = arith.truncf %21 : vector<4x16x16xf32> to vector<4x16x16xbf16>
    %c0_11 = arith.constant 0 : index
    %c0_12 = arith.constant 0 : index
    %c0_13 = arith.constant 0 : index
    %c0_14 = arith.constant 0 : index
    %23 = vector.load %arg6[%c0_11, %c0_12, %c0_13, %c0_14] : memref<1x4x16x16xbf16, #tpu.memory_space<vmem>>, vector<1x4x16x16xbf16>
    %24 = vector.shape_cast %23 : vector<1x4x16x16xbf16> to vector<4x16x16xbf16>
    %25 = vector.shape_cast %22 : vector<4x16x16xbf16> to vector<1x4x16x16xbf16>
    tpu.vector_store %arg6[%c0_11, %c0_12, %c0_13, %c0_14], %25 {strides = array<i32>} : memref<1x4x16x16xbf16, #tpu.memory_space<vmem>>, vector<1x4x16x16xbf16>,
    return
  }
  func.func @transform_0(%arg0: i32, %arg1: i32) -> (i32, i32, i32) {
    %c0_i32 = arith.constant 0 : i32
    %c0_i32_0 = arith.constant 0 : i32
    return %arg0, %arg1, %c0_i32 : i32, i32, i32
  }
  func.func @transform_1(%arg0: i32, %arg1: i32) -> (i32, i32, i32) {
    %c0_i32 = arith.constant 0 : i32
    %c0_i32_0 = arith.constant 0 : i32
    %c0_i32_1 = arith.constant 0 : i32
    return %arg0, %c0_i32, %c0_i32_0 : i32, i32, i32
  }
  func.func @transform_2(%arg0: i32, %arg1: i32) -> (i32, i32) {
    %c0_i32 = arith.constant 0 : i32
    %c0_i32_0 = arith.constant 0 : i32
    %c0_i32_1 = arith.constant 0 : i32
    return %c0_i32, %c0_i32_0 : i32, i32
  }
  func.func @transform_3(%arg0: i32, %arg1: i32) -> (i32, i32) {
    %c0_i32 = arith.constant 0 : i32
    %c0_i32_0 = arith.constant 0 : i32
    %c0_i32_1 = arith.constant 0 : i32
    return %c0_i32, %c0_i32_0 : i32, i32
  }
  func.func @transform_4(%arg0: i32, %arg1: i32) -> (i32, i32, i32, i32) {
    %c0_i32 = arith.constant 0 : i32
    %c0_i32_0 = arith.constant 0 : i32
    %c0_i32_1 = arith.constant 0 : i32
    return %arg0, %c0_i32, %arg1, %c0_i32_0 : i32, i32, i32, i32
  }
}

</mosaic_0001>

<bundles_post_ra>
// kernel: tpu_custom_call.1
= control target key start
LH: loop header
LB: loop body
LE: loop exit
PB: predicated region body
PF: predicated region fallthrough
CT: control target
= control target key end

     0   :  { %s2403_s0 = inlined_call_operand.hbm [shape: f32[2,16,32], index: 0, kind: input, shape index: {}]   ;;  %s2404_s1 = inlined_call_operand.hbm [shape: f32[2,16,32], index: 1, kind: input, shape index: {}]   ;;  %s2405_s2 = inlined_call_operand.hbm [shape: bf16[32,32], index: 2, kind: input, shape index: {}]   ;;  %s2406_s3 = inlined_call_operand.hbm [shape: bf16[32,32], index: 3, kind: input, shape index: {}]   ;;  %s2407_s4 = inlined_call_operand.hbm [shape: bf16[2,4,16,16], index: 4, kind: output, shape index: {}]  }
   0x1   :  { %2410 = sst [smem:[#allocation19_spill]] %s2405_s2 }
   0x2   :  { %2411 = sst [smem:[#allocation20_spill]] %s2406_s3 }
   0x3   :  { %9 = vsyncpa [#allocation4], 0 }
   0x4   :  { %11 = vsyncpa [#allocation4 + $0x1], 0 }
   0x5   :  { %12 = vsyncpa [#allocation7], 0 }
   0x6   :  { %14 = vsyncpa [#allocation7 + $0x1], 0 }
   0x7   :  { %15 = vsyncpa [#allocation10], 0 }
   0x8   :  { %16 = vsyncpa [#allocation5], 0 }
   0x9   :  { %18 = vsyncpa [#allocation5 + $0x1], 0  ;;  %s1872_s15 = smov 0   ;;  %s1874_s16 = smov 0  }
   0xa   :  { %s1876_s17 = smov 0   ;;  %s1878_s18 = smov 0  }
   0xb   :  { %s1880_s19 = smov 0   ;;  %s1882_s20 = smov 0  }
   0xc LB: > { %2412 = sst [smem:[#allocation17_spill]] %s1828_s19  ;;  %s1903_s21 = sadd.s32 4294967295, %s1832_s20   ;;  %s1832_s20 = sphi %s1882_s20, %s24_s20   ;;  %s1828_s19 = sphi %s1880_s19, %s2422_s19   ;;  %s1824_s18 = sphi %s1878_s18, %s2421_s18   ;;  %s1820_s17 = sphi %s1876_s17, %s2425_s17   ;;  %s1816_s16 = sphi %s1874_s16, %s2424_s16   ;;  %s1812_s15 = sphi %s1872_s15, %s2423_s15  }
   0xd   : > { %s1386_s22 = sadd.s32 4294967294, %s1832_s20   ;;  %p58_p0 = scmp.ne.s32.totalorder %s1816_s16, %s1812_s15 }
   0xe   : > { %p59_p1 = scmp.eq.s32.totalorder %s1903_s21, 0  ;;  %p152_p2 = scmp.eq.s32.totalorder %s1903_s21, 1 }
   0xf   : > { %p158_p3 = scmp.eq.s32.totalorder %s1386_s22, 1  ;;  %p1387_p5 = scmp.ge.s32.totalorder %s1832_s20, 1 }
  0x10   : > { %p1912_p4 = por %p59_p1, %p58_p0  ;;  %p165_p7 = scmp.lt.s32.totalorder %s1832_s20, 3 }
  0x11   : > { %p1917_p6 = por %p158_p3, %p58_p0  ;;  %s2415_s2 = sld [smem:[#allocation19_spill]] }
  0x12   : > { %p1925_p8 = pnand %p1387_p5, %p165_p7  ;;  %s1834_s29 = smov [#allocation8]  }
  0x13   : > { %s178_s30 = sshll.u32 %s1834_s29, 4  ;;  %p1390_p11 = scmp.ge.s32.totalorder %s1832_s20, 2  ;;  %s179_s30 = int_to_ptr.vmem [resolvable:$true] %s178_s30 }
  0x14   : > { %p1471_p9 = pneg %p1925_p8  ;;  %s2417_s3 = sld [smem:[#allocation20_spill]] }
  0x15   : > { %s1835_s8 = smov 64   ;;  %s1836_s9 = smov 4  }
  0x16   : > { %p1472_p10 = pnand %p1471_p9, %p59_p1  ;;  %s1837_s10 = smov [#allocation9]  }
  0x17   : > { %s176_s27 = sshll.u32 %s2415_s2, 4  ;;  %s192_s11 = sshll.u32 %s1837_s10, 4  ;;  %s177_s27 = int_to_ptr.hbm [resolvable:$true] %s176_s27  ;;  %s193_s11 = int_to_ptr.vmem [resolvable:$true] %s192_s11 }
  0x18   : > { %1474 = dma.hbm_to_vmem [thread:$0]  (!%p1472_p10), %s177_s27, 256, %s179_s30, [#allocation7], %s1835_s8, %s1835_s8, %s1836_s9  }
  0x19   : > { %s36_s12 = sadd.s32 1, %s1828_s19  ;;  %s45_s13 = sadd.s32 1, %s1820_s17 }
  0x1a   : > { %s190_s7 = sshll.u32 %s2417_s3, 4  ;;  %p38_p12 = scmp.ge.s32.totalorder %s36_s12, 2  ;;  %s191_s7 = int_to_ptr.hbm [resolvable:$true] %s190_s7 }
  0x1b   : > { %1477 = dma.hbm_to_vmem [thread:$0]  (!%p1472_p10), %s191_s7, 256, %s193_s11, [#allocation10], %s1835_s8, %s1835_s8, %s1836_s9  }
  0x1c   : > { %p52_p13 = scmp.ne.s32.totalorder %s1820_s17, %s1816_s16  ;;  %p53_p0 = scmp.eq.s32.totalorder %s1832_s20, 0 }
  0x1d   : > { %p1491_p3 = scmp.lt.s32.totalorder %s1832_s20, 2  ;;  %s2427_s12 = smov (%p38_p12, %s36_s12), 0 }
  0x1e   : > { %2418 = sst [smem:[#allocation18_spill]] %s2427_s12  ;;  %p1945_p5 = por %p53_p0, %p52_p13 }
  0x1f   : > { %p1951_p7 = por %p152_p2, %p52_p13  ;;  %s40_s25 = ssub.s32 %s1828_s19, %s2427_s12 }
  0x20   : > { %s206_s26 = sand.u32 1, %s1820_s17   ;;  %p43_p9 = scmp.eq.s32.totalorder %s40_s25, 0 }
  0x21   : > { %s1391_s27 = sshll.u32 %s206_s26, 4  ;;  %s1446_s29 = sshll.u32 %s1828_s19, 4 }
  0x22   : > { %s1960_s30 = scalar_select %p43_p9, %s1820_s17, %s45_s13  }
  0x23   : > { %s217_s7 = scalar_lea.hbm %s2403_s0, %s1446_s29  ;;  %s210_s9 = scalar_lea.vmem [#allocation3], %s1391_s27 }
  0x24   : > { %s218_s8 = sshll.u32 %s217_s7, 4  ;;  %s220_s10 = sshll.u32 %s210_s9, 4  ;;  %s219_s8 = int_to_ptr.hbm [resolvable:$true] %s218_s8  ;;  %s221_s10 = int_to_ptr.vmem [resolvable:$true] %s220_s10 }
  0x25   : > { %p1479_p2 = pnand %p1491_p3, %p1945_p5  ;;  %s239_s25 = scalar_lea.hbm %s2404_s1, %s1446_s29 }
  0x26   : > { %s207_s3 = scalar_lea.sflag [#allocation4], %s206_s26  ;;  %s1838_s13 = smov 128  }
  0x27   : > { %s1839_s12 = smov 8   ;;  %s240_s19 = sshll.u32 %s239_s25, 4  ;;  %s241_s19 = int_to_ptr.hbm [resolvable:$true] %s240_s19 }
  0x28   : > { %1481 = dma.hbm_to_vmem [thread:$0]  (!%p1479_p2), %s219_s8, 256, %s221_s10, %s207_s3, %s1838_s13, %s1838_s13, %s1839_s12  }
  0x29   : > { %s234_s5 = scalar_lea.vmem [#allocation6], %s1391_s27  ;;  %s230_s7 = sand.u32 1, %s1832_s20  }
  0x2a   : > { %s242_s6 = sshll.u32 %s234_s5, 4  ;;  %s231_s9 = scalar_lea.sflag [#allocation7], %s230_s7  ;;  %s243_s6 = int_to_ptr.vmem [resolvable:$true] %s242_s6 }
  0x2b   : > { %1484 = dma.hbm_to_vmem [thread:$0]  (!%p1479_p2), %s241_s19, 256, %s243_s6, %s231_s9, %s1838_s13, %s1838_s13, %s1839_s12  }
  0x2c   : > { %254 = sbr.rel (%p1925_p8) target bundleno = 812 (0x32c), region = 36  ;;  %s1976_s14 = sand.u32 (!%p1925_p8), 1, %s1816_s16  }
  0x2d   : > { %s1398_s2 = sshll.u32 (!%p1925_p8), %s1976_s14, 4  ;;  %s257_s26 = scalar_lea.sflag (!%p1925_p8), [#allocation4], %s1976_s14 }
  0x2e   : > { %s260_s3 = scalar_lea.vmem (!%p1925_p8), [#allocation3], %s1398_s2 }
  0x31   : > { %1791 = dma.done.wait (%p1912_p4), %s257_s26, 256  }
  0x32   : > { %1793 = vsyncadd (%p1912_p4), %s257_s26, 4294967040  ;;  %s266_s19 = sand.u32 1, %s1903_s21   ;;  %s270_s28 = scalar_lea.vmem [#allocation6], %s1398_s2 }
  0x33   : > { %s267_s12 = scalar_lea.sflag [#allocation7], %s266_s19 }
  0x34   : > { %1795 = dma.done.wait (%p1912_p4), %s267_s12, 256  }
  0x35   : > { %1797 = vsyncadd (%p1912_p4), %s267_s12, 4294967040 }
  0x36   : > { %1799 = dma.done.wait (%p59_p1), [#allocation7], 256  }
  0x37   : > { %1801 = vsyncadd (%p59_p1), [#allocation7], 4294967040 }
  0x38   : > { %1803 = dma.done.wait (%p59_p1), [#allocation10], 256  }
  0x39   : > { %1805 = vsyncadd (%p59_p1), [#allocation10], 4294967040  ;;  %v1449_v0 = vld [vmem:[#allocation9 + $0x8] sm:$0xff]  ;;  %v1451_v1 = vld [vmem:[#allocation8 + $0x8] sm:$0xff]  ;;  %vm337_vm0 = vcmask 261120   ;;  %s1840_s21 = smov 104  }
  0x3a   : > { %347 = vmatpush.bf16.msra.mxu0 %v1449_v0  ;;  %v1448_v2 = vld [vmem:[#allocation9] sm:$0xff]  ;;  %v319_v4 = vld [vmem:[%s270_s28 + $0x8] sm:$0xff]  ;;  %642 = vmatpush.bf16.msra.mxu1 %v1451_v1  ;;  %v1450_v5 = vld [vmem:[#allocation8] sm:$0xff]  ;;  %s1841_s23 = smov 112   ;;  %s1842_s27 = smov 120   ;;  %vm376_vm1 = vcmask 1047556  }
  0x3b   : > { %v318_v3 = vld [vmem:[%s270_s28] sm:$0xff]  ;;  %v614_v7 = vld [vmem:[%s260_s3 + $0x8] sm:$0xff]  ;;  %v1843_v22 = vmov 1983009808   ;;  %v1844_v40 = vmov 1934713408  }
  0x3c   : > { %v613_v6 = vld [vmem:[%s260_s3] sm:$0xff]  ;;  %v320_v8 = vpack.c.bf16 %v319_v4, %v318_v3  ;;  %v381_v23 = vunpack.c.l.s4 %v1843_v22  ;;  %v405_v41 = vunpack.c.l.s4 %v1844_v40  ;;  %vm604_vm2 = vcmask 60416   ;;  %s1402_s29 = sshll.u32 %s1976_s14, 5  ;;  %s1456_s10 = sshll.u32 %s1824_s18, 5 }
  0x3d   : > { %v615_v9 = vpack.c.bf16 %v614_v7, %v613_v6  ;;  %vm917_vm3 = vcmask 64512   ;;  %vm1028_vm4 = vcmask 130048   ;;  %vm1229_vm10 = vcmask 125952   ;;  %s2316_s8 = scalar_lea.vmem [#allocation11], %s1402_s29  ;;  %s1252_s25 = scalar_lea.hbm %s2407_s4, %s1456_s10 }
  0x3e   : > { %348 = vmatpush.bf16.msra.mxu0 %v1448_v2  ;;  %643 = vmatpush.bf16.msra.mxu1 %v1450_v5  ;;  %v2003_v28 = vunpack.c.0.s8 %v381_v23  ;;  %v2037_v60 = vunpack.c.0.s8 %v405_v41  ;;  %s1253_s13 = sshll.u32 %s2316_s8, 4  ;;  %s1255_s5 = sshll.u32 %s1252_s25, 4  ;;  %s1254_s13 = int_to_ptr.vmem [resolvable:$true] %s1253_s13  ;;  %s1256_s5 = int_to_ptr.hbm [resolvable:$true] %s1255_s5 }
  0x3f   : > { %s1239_s6 = scalar_lea.sflag [#allocation5], %s1976_s14  ;;  %s1752_s7 = sshra.s32 %s1256_s5, 4  ;;  %s1753_s7 = int_to_ptr.hbm [resolvable:$true] %s1752_s7 }
  0x40   : > { %s1754_s9 = scalar_lea.hbm %s1753_s7, 32  ;;  %s1758_s3 = scalar_lea.hbm %s2407_s4, 64 }
  0x41   : > { %1411 = vmatmul.msk.bf16.vlgmr.msra.gmra.mxu0 %vm337_vm0, %v320_v8  ;;  %1420 = vmatmul.msk.bf16.vlgmr.msra.gmra.mxu1 %vm337_vm0, %v615_v9  ;;  %p1755_p1 = scmp.ne.s32.totalorder %s1753_s7, %s1754_s9  ;;  %p1759_p10 = scmp.lt.s32.totalorder %s1753_s7, %s2407_s4 }
  0x42   : > { %p1760_p12 = scmp.lt.s32.totalorder %s1758_s3, %s1754_s9 }
  0x43   : > { %p1756_p4 = pnand %p1755_p1, %p1951_p7 }
  0x44   : > { %p1761_p13 = por %p1760_p12, %p1759_p10 }
  0x45   : > { %p1757_p8 = pneg %p1756_p4 }
  0x47   : > { %p1762_p0 = pnand %p1761_p13, %p1757_p8 }
  0xbe   : > { %v350_v10 = vpop.f32.mrf.mxu0  ;;  %v1997_v11 = vpop.f32.mrf.mxu1 }
  0xbf   : > { %v378_v37 = vrot.slane %v350_v10, 4  ;;  %v673_v53 = vrot.slane %v1997_v11, 4 }
  0xc6   : > { %v352_v12 = vpop.f32.mrf.mxu0  ;;  %v1999_v14 = vpop.f32.mrf.mxu1 }
  0xc7   : > { %v1566_v13 = vpack.i.bf16 %v352_v12, %v350_v10  ;;  %v1576_v15 = vpack.i.bf16 %v1999_v14, %v1997_v11  ;;  %v434_v38 = vrot.slane %v352_v12, 4  ;;  %v729_v57 = vrot.slane %v1999_v14, 4 }
  0xc9   : > { %1567 = vrot.lane.b32.xlu1 %v1566_v13, %s1840_s21  ;;  %1557 = vrot.lane.b32.xlu0 %v1566_v13, %s1841_s23 }
  0xca   : > { %1577 = vrot.lane.b32.xlu2 %v1576_v15, %s1842_s27 }
  0xd1   : > { %1572 = vrot.lane.b32.xlu1 %v1576_v15, %s1841_s23  ;;  %1562 = vrot.lane.b32.xlu0 %v1566_v13, %s1842_s27 }
  0xd2   : > { %1582 = vrot.lane.b32.xlu2 %v1576_v15, %s1840_s21 }
 0x124   : > { %v1578_v16 = vpop.permute.xlu2 %1577 }
 0x125   : > { %v1579_v18 = vunpack.i.l.bf16 %v1578_v16  ;;  %v1580_v19 = vunpack.i.h.bf16 %v1578_v16 }
 0x127   : > { %v685_v24 = vrot.slane %v1579_v18, 4  ;;  %v741_v25 = vrot.slane %v1580_v19, 4 }
 0x12c   : > { %v1583_v17 = vpop.permute.xlu2 %1582 }
 0x12d   : > { %v1584_v20 = vunpack.i.l.bf16 %v1583_v17  ;;  %v1585_v21 = vunpack.i.h.bf16 %v1583_v17 }
 0x12f   : > { %v683_v26 = vrot.slane %v1584_v20, 4  ;;  %v739_v27 = vrot.slane %v1585_v21, 4  ;;  %v686_v29 = vsel %vm376_vm1, %v1584_v20, %v685_v24  ;;  %v742_v31 = vsel %vm376_vm1, %v1585_v21, %v741_v25 }
 0x130   : > { %v2012_v39 = vperm.slane %v686_v29, %v2003_v28  ;;  %v750_v43 = vperm.slane %v742_v31, %v2003_v28 }
 0x131   : > { %v684_v30 = vsel %vm376_vm1, %v683_v26, %v1579_v18  ;;  %v740_v34 = vsel %vm376_vm1, %v739_v27, %v1580_v19 }
 0x132   : > { %v2015_v42 = vperm.slane %v684_v30, %v2003_v28  ;;  %v746_v46 = vperm.slane %v740_v34, %v2003_v28  ;;  %v707_v58 = vrot.slane %v2012_v39, 4  ;;  %v763_v59 = vrot.slane %v750_v43, 4 }
 0x134   : > { %v695_v61 = vrot.slane %v2015_v42, 4  ;;  %v751_v62 = vrot.slane %v746_v46, 4 }
 0x13b   : > { %v2008_v32 = vpop.permute.xlu1 %1567  ;;  %v1558_v33 = vpop.permute.xlu0 %1557 }
 0x13c   : > { %v1560_v35 = vunpack.i.h.bf16 %v1558_v33  ;;  %v1559_v36 = vunpack.i.l.bf16 %v1558_v33  ;;  %v1570_v47 = vunpack.i.h.bf16 %v2008_v32  ;;  %v1569_v50 = vunpack.i.l.bf16 %v2008_v32 }
 0x13e   : > { %v432_v44 = vrot.slane %v1560_v35, 4  ;;  %v375_v45 = vrot.slane %v1559_v36, 4  ;;  %v379_v48 = vsel %vm376_vm1, %v1559_v36, %v378_v37  ;;  %v435_v49 = vsel %vm376_vm1, %v1560_v35, %v434_v38 }
 0x13f   : > { %v2030_v55 = vperm.slane %v379_v48, %v2003_v28  ;;  %v2033_v56 = vperm.slane %v435_v49, %v2003_v28  ;;  %v444_v63 = vrot.slane %v1570_v47, 4  ;;  %v388_v3 = vrot.slane %v1569_v50, 4 }
 0x140   : > { %v433_v51 = vsel %vm376_vm1, %v432_v44, %v352_v12  ;;  %v377_v52 = vsel %vm376_vm1, %v375_v45, %v350_v10 }
 0x141   : > { %v2027_v54 = vperm.slane %v433_v51, %v2003_v28  ;;  %v2043_v0 = vperm.slane %v377_v52, %v2003_v28  ;;  %v414_v8 = vrot.slane %v2030_v55, 4  ;;  %v470_v9 = vrot.slane %v2033_v56, 4 }
 0x143   : > { %v1573_v1 = vpop.permute.xlu1 %1572  ;;  %v2045_v2 = vpop.permute.xlu0 %1562  ;;  %v458_v7 = vrot.slane %v2027_v54, 4  ;;  %v402_v17 = vrot.slane %v2043_v0, 4 }
 0x144   : > { %v1575_v4 = vunpack.i.h.bf16 %v1573_v1  ;;  %v1574_v5 = vunpack.i.l.bf16 %v1573_v1  ;;  %v1565_v6 = vunpack.i.h.bf16 %v2045_v2  ;;  %v1564_v10 = vunpack.i.l.bf16 %v2045_v2 }
 0x146   : > { %v727_v12 = vrot.slane %v1575_v4, 4  ;;  %v730_v13 = vsel %vm376_vm1, %v1575_v4, %v729_v57  ;;  %v670_v15 = vrot.slane %v1574_v5, 4  ;;  %v674_v16 = vsel %vm376_vm1, %v1574_v5, %v673_v53 }
 0x147   : > { %v738_v18 = vperm.slane %v730_v13, %v2003_v28  ;;  %v682_v19 = vperm.slane %v674_v16, %v2003_v28  ;;  %v445_v20 = vsel %vm376_vm1, %v444_v63, %v1565_v6  ;;  %v446_v23 = vrot.slane %v1565_v6, 4 }
 0x148   : > { %v728_v21 = vsel %vm376_vm1, %v727_v12, %v1999_v14  ;;  %v672_v22 = vsel %vm376_vm1, %v670_v15, %v1997_v11  ;;  %v2065_v24 = vperm.slane %v445_v20, %v2003_v28  ;;  %v389_v11 = vsel %vm376_vm1, %v388_v3, %v1564_v10 }
 0x149   : > { %v734_v25 = vperm.slane %v728_v21, %v2003_v28  ;;  %v764_v26 = vsel %vm376_vm1, %v763_v59, %v738_v18  ;;  %v765_v27 = vrot.slane %v738_v18, 4  ;;  %v678_v29 = vperm.slane %v672_v22, %v2003_v28 }
 0x14a   : > { %v770_v30 = vperm.slane %v764_v26, %v2037_v60  ;;  %v708_v31 = vsel %vm376_vm1, %v707_v58, %v682_v19  ;;  %v709_v33 = vrot.slane %v682_v19, 4  ;;  %v447_v53 = vsel %vm376_vm1, %v1570_v47, %v446_v23 }
 0x14b   : > { %v752_v14 = vsel %vm376_vm1, %v751_v62, %v734_v25  ;;  %v753_v34 = vrot.slane %v734_v25, 4  ;;  %v766_v35 = vsel %vm376_vm1, %v750_v43, %v765_v27  ;;  %v696_v36 = vsel %vm376_vm1, %v695_v61, %v678_v29 }
 0x14c   : > { %v758_v37 = vperm.slane %v752_v14, %v2037_v60  ;;  %v774_v38 = vperm.slane %v766_v35, %v2037_v60  ;;  %v779_v40 = vrot.slane %v770_v30, 4  ;;  %v697_v41 = vrot.slane %v678_v29, 4 }
 0x14d   : > { %v754_v44 = vsel %vm376_vm1, %v746_v46, %v753_v34  ;;  %v702_v45 = vperm.slane %v696_v36, %v2037_v60  ;;  %v710_v48 = vsel %vm376_vm1, %v2012_v39, %v709_v33  ;;  %v714_v49 = vperm.slane %v708_v31, %v2037_v60 }
 0x14e   : > { %v762_v51 = vperm.slane %v754_v44, %v2037_v60  ;;  %v775_v43 = vrot.slane %v758_v37, 4  ;;  %v781_v52 = vrot.slane %v774_v38, 4  ;;  %v698_v57 = vsel %vm376_vm1, %v2015_v42, %v697_v41 }
 0x14f   : > { %v718_v46 = vperm.slane %v710_v48, %v2037_v60  ;;  %v719_v58 = vrot.slane %v702_v45, 4  ;;  %v723_v59 = vrot.slane %v714_v49, 4  ;;  %v780_v39 = vsel %vm376_vm1, 0.0, %v779_v40 }
 0x150   : > { %v777_v61 = vrot.slane %v762_v51, 4  ;;  %v782_v62 = vsel %vm376_vm1, 0.0, %v781_v52  ;;  %v848_v63 = vsel %vm376_vm1, %v781_v52, %v770_v30  ;;  %v776_v1 = vsel %vm376_vm1, 0.0, %v775_v43 }
 0x151   : > { %v2097_v3 = vperm.slane %v848_v63, %v2003_v28  ;;  %v853_v47 = vrot.slane %v782_v62, 4  ;;  %v706_v4 = vperm.slane %v698_v57, %v2037_v60  ;;  %v720_v6 = vsel %vm376_vm1, 0.0, %v719_v58 }
 0x152   : > { %v778_v42 = vsel %vm376_vm1, 0.0, %v777_v61  ;;  %v837_v5 = vsel %vm376_vm1, %v777_v61, %v758_v37  ;;  %v725_v12 = vrot.slane %v718_v46, 4  ;;  %v724_v18 = vsel %vm376_vm1, 0.0, %v723_v59 }
 0x153   : > { %v842_v13 = vrot.slane %v778_v42, 4  ;;  %v854_v15 = vsel %vm376_vm1, %v853_v47, %v780_v39  ;;  %v721_v16 = vrot.slane %v706_v4, 4  ;;  %v2106_v19 = vperm.slane %v837_v5, %v2003_v28 }
 0x154   : > { %v726_v20 = vsel %vm376_vm1, 0.0, %v725_v12  ;;  %v794_v21 = vsel %vm376_vm1, %v725_v12, %v714_v49  ;;  %v455_v22 = vperm.slane %v447_v53, %v2003_v28  ;;  %v2113_v25 = vperm.slane %v854_v15, %v2003_v28 }
 0x155   : > { %v843_v23 = vsel %vm376_vm1, %v842_v13, %v776_v1  ;;  %v722_v26 = vsel %vm376_vm1, 0.0, %v721_v16  ;;  %v783_v27 = vsel %vm376_vm1, %v721_v16, %v702_v45  ;;  %v2121_v31 = vperm.slane %v794_v21, %v2003_v28 }
 0x156   : > { %v2118_v29 = vperm.slane %v843_v23, %v2003_v28  ;;  %v788_v30 = vrot.slane %v722_v26, 4  ;;  %v799_v33 = vrot.slane %v726_v20, 4  ;;  %v456_v14 = vrot.slane %v2065_v24, 4 }
 0x157   : > { %v468_v34 = vrot.slane %v455_v22, 4  ;;  %v390_v35 = vrot.slane %v1564_v10, 4  ;;  %v395_v36 = vperm.slane %v389_v11, %v2003_v28  ;;  %v2128_v37 = vperm.slane %v783_v27, %v2003_v28 }
 0x158   : > { %v789_v38 = vsel %vm376_vm1, %v788_v30, %v720_v6  ;;  %v2132_v40 = vsel %vm376_vm1, %v799_v33, %v724_v18  ;;  %v459_v41 = vsel %vm376_vm1, %v2065_v24, %v458_v7  ;;  %v471_v11 = vsel %vm376_vm1, %v455_v22, %v470_v9 }
 0x159   : > { %v2139_v44 = vperm.slane %v789_v38, %v2003_v28  ;;  %v391_v2 = vsel %vm376_vm1, %v1569_v50, %v390_v35  ;;  %v400_v10 = vrot.slane %v395_v36, 4  ;;  %v403_v48 = vsel %vm376_vm1, %v395_v36, %v402_v17 }
 0x15a   : > { %v399_v45 = vperm.slane %v391_v2, %v2003_v28  ;;  %v457_v7 = vsel %vm376_vm1, %v456_v14, %v2027_v54  ;;  %v467_v24 = vperm.slane %v459_v41, %v2037_v60  ;;  %v411_v50 = vperm.slane %v403_v48, %v2037_v60 }
 0x15b   : > { %v401_v32 = vsel %vm376_vm1, %v400_v10, %v2043_v0  ;;  %v463_v49 = vperm.slane %v457_v7, %v2037_v60  ;;  %v469_v9 = vsel %vm376_vm1, %v468_v34, %v2033_v56  ;;  %v479_v0 = vperm.slane %v471_v11, %v2037_v60 }
 0x15c   : > { %v407_v51 = vperm.slane %v401_v32, %v2037_v60  ;;  %v412_v43 = vrot.slane %v399_v45, 4  ;;  %v415_v17 = vsel %vm376_vm1, %v399_v45, %v414_v8  ;;  %v475_v54 = vperm.slane %v469_v9, %v2037_v60 }
 0x15d   : > { %v423_v52 = vperm.slane %v415_v17, %v2037_v60  ;;  %v426_v53 = vrot.slane %v411_v50, 4  ;;  %v480_v57 = vrot.slane %v463_v49, 4  ;;  %v482_v56 = vrot.slane %v467_v24, 4 }
 0x15e   : > { %v413_v46 = vsel %vm376_vm1, %v412_v43, %v2030_v55  ;;  %v424_v58 = vrot.slane %v407_v51, 4  ;;  %v484_v59 = vrot.slane %v475_v54, 4  ;;  %v486_v4 = vrot.slane %v479_v0, 4 }
 0x15f   : > { %v419_v61 = vperm.slane %v413_v46, %v2037_v60  ;;  %v427_v39 = vsel %vm376_vm1, 0.0, %v426_v53  ;;  %v430_v62 = vrot.slane %v423_v52, 4  ;;  %v481_v8 = vsel %vm376_vm1, 0.0, %v480_v57 }
 0x160   : > { %v425_v63 = vsel %vm376_vm1, 0.0, %v424_v58  ;;  %v483_v1 = vsel %vm376_vm1, 0.0, %v482_v56  ;;  %v485_v47 = vsel %vm376_vm1, 0.0, %v484_v59  ;;  %v488_v5 = vsel %vm376_vm1, %v426_v53, %v407_v51 }
 0x161   : > { %v428_v42 = vrot.slane %v419_v61, 4  ;;  %v431_v55 = vsel %vm376_vm1, 0.0, %v430_v62  ;;  %v493_v6 = vrot.slane %v427_v39, 4  ;;  %v487_v12 = vsel %vm376_vm1, 0.0, %v486_v4 }
 0x162   : > { %v492_v13 = vperm.slane %v488_v5, %v2003_v28  ;;  %v499_v15 = vsel %vm376_vm1, %v430_v62, %v419_v61  ;;  %v504_v16 = vrot.slane %v431_v55, 4  ;;  %v542_v22 = vsel %vm376_vm1, %v482_v56, %v463_v49 }
 0x163   : > { %v429_v18 = vsel %vm376_vm1, 0.0, %v428_v42  ;;  %v494_v20 = vsel %vm376_vm1, %v493_v6, %v425_v63  ;;  %v503_v21 = vperm.slane %v499_v15, %v2003_v28  ;;  %v546_v30 = vperm.slane %v542_v22, %v2003_v28 }
 0x164   : > { %v498_v23 = vperm.slane %v494_v20, %v2003_v28  ;;  %v505_v26 = vsel %vm376_vm1, %v504_v16, %v429_v18  ;;  %v512_v27 = vrot.slane %v492_v13, 4  ;;  %v547_v34 = vrot.slane %v483_v1, 4 }
 0x165   : > { %v509_v33 = vperm.slane %v505_v26, %v2003_v28  ;;  %v524_v14 = vrot.slane %v503_v21, 4  ;;  %v553_v35 = vsel %vm376_vm1, %v486_v4, %v475_v54  ;;  %v558_v2 = vrot.slane %v487_v12, 4 }
 0x166   : > { %v510_v36 = vrot.slane %v498_v23, 4  ;;  %v513_v38 = vsel %vm376_vm1, %v498_v23, %v512_v27  ;;  %v557_v41 = vperm.slane %v553_v35, %v2003_v28  ;;  %v548_v48 = vsel %vm376_vm1, %v547_v34, %v481_v8 }
 0x167   : > { %v521_v10 = vperm.slane %v513_v38, %v2037_v60  ;;  %v522_v11 = vrot.slane %v509_v33, 4  ;;  %v525_v45 = vsel %vm376_vm1, %v509_v33, %v524_v14  ;;  %v552_v32 = vperm.slane %v548_v48, %v2003_v28 }
 0x168   : > { %v511_v7 = vsel %vm376_vm1, %v510_v36, %v492_v13  ;;  %v533_v24 = vperm.slane %v525_v45, %v2037_v60  ;;  %v559_v50 = vsel %vm376_vm1, %v558_v2, %v485_v47  ;;  %v566_v53 = vrot.slane %v546_v30, 4 }
 0x169   : > { %v517_v49 = vperm.slane %v511_v7, %v2037_v60  ;;  %v523_v9 = vsel %vm376_vm1, %v522_v11, %v503_v21  ;;  %v540_v51 = vrot.slane %v521_v10, 4  ;;  %v563_v43 = vperm.slane %v559_v50, %v2003_v28 }
 0x16a   : > { %v529_v17 = vperm.slane %v523_v9, %v2037_v60  ;;  %v538_v54 = vrot.slane %v533_v24, 4  ;;  %v564_v52 = vrot.slane %v552_v32, 4  ;;  %v578_v58 = vrot.slane %v557_v41, 4 }
 0x16b   : > { %v536_v0 = vrot.slane %v517_v49, 4  ;;  %v541_v57 = vsel %vm376_vm1, %v533_v24, %v540_v51  ;;  %v576_v46 = vrot.slane %v563_v43, 4  ;;  %v567_v39 = vsel %vm376_vm1, %v552_v32, %v566_v53 }
 0x16c   : > { %v534_v56 = vrot.slane %v529_v17, 4  ;;  %v539_v59 = vsel %vm376_vm1, %v538_v54, %v521_v10  ;;  %v565_v61 = vsel %vm376_vm1, %v564_v52, %v546_v30  ;;  %v575_v63 = vperm.slane %v567_v39, %v2037_v60 }
 0x16d   : > { %v537_v62 = vsel %vm376_vm1, %v529_v17, %v536_v0  ;;  %v571_v8 = vperm.slane %v565_v61, %v2037_v60  ;;  %v577_v1 = vsel %vm376_vm1, %v576_v46, %v557_v41  ;;  %v579_v4 = vsel %vm376_vm1, %v563_v43, %v578_v58 }
 0x16e   : > { %v535_v47 = vsel %vm376_vm1, %v534_v56, %v517_v49  ;;  %v583_v42 = vperm.slane %v577_v1, %v2037_v60  ;;  %v598_v55 = vpack.c.bf16 %v537_v62, %v537_v62  ;;  %v587_v5 = vperm.slane %v579_v4, %v2037_v60 }
 0x16f   : > { %v590_v6 = vrot.slane %v571_v8, 4  ;;  %v594_v12 = vrot.slane %v575_v63, 4  ;;  %v596_v13 = vpack.c.bf16 %v535_v47, %v535_v47  ;;  %v804_v15 = vperm.slane %v2132_v40, %v2003_v28 }
 0x170   : > { %v588_v16 = vrot.slane %v583_v42, 4  ;;  %v600_v18 = vpack.c.bf16 %v539_v59, %v539_v59  ;;  %v602_v20 = vpack.c.bf16 %v541_v57, %v541_v57  ;;  %607 = vst.msk [vmem:[#allocation2 + $0x8] sm:$0xf] %vm604_vm2, %v598_v55  ;;  %v592_v22 = vrot.slane %v587_v5, 4 }
 0x171   : > { %v591_v21 = vsel %vm376_vm1, %v583_v42, %v590_v6  ;;  %v595_v23 = vsel %vm376_vm1, %v587_v5, %v594_v12  ;;  %605 = vst.msk [vmem:[#allocation2] sm:$0xf] %vm604_vm2, %v596_v13  ;;  %v807_v26 = vrot.slane %v2128_v37, 4  ;;  %v819_v28 = vrot.slane %v2121_v31, 4 }
 0x172   : > { %v589_v27 = vsel %vm376_vm1, %v588_v16, %v571_v8  ;;  %v599_v30 = vpack.c.bf16 %v591_v21, %v591_v21  ;;  %v603_v33 = vpack.c.bf16 %v595_v23, %v595_v23  ;;  %609 = vst.msk [vmem:[#allocation2 + $0x10] sm:$0xf] %vm604_vm2, %v600_v18  ;;  %v593_v40 = vsel %vm376_vm1, %v592_v22, %v575_v63 }
 0x173   : > { %v597_v14 = vpack.c.bf16 %v589_v27, %v589_v27  ;;  %611 = vst.msk [vmem:[#allocation2 + $0x18] sm:$0xf] %vm604_vm2, %v602_v20  ;;  %v808_v34 = vsel %vm376_vm1, %v2139_v44, %v807_v26  ;;  %v861_v35 = vrot.slane %v2106_v19, 4  ;;  %v601_v36 = vpack.c.bf16 %v593_v40, %v593_v40 }
 0x174   : > { %608 = vst.msk [vmem:[#allocation2 + $0xc] sm:$0xf] %vm604_vm2, %v599_v30  ;;  %v816_v38 = vperm.slane %v808_v34, %v2037_v60  ;;  %v820_v41 = vsel %vm376_vm1, %v804_v15, %v819_v28  ;;  %v873_v2 = vrot.slane %v2097_v3, 4  ;;  %v805_v45 = vrot.slane %v2139_v44, 4 }
 0x175   : > { %606 = vst.msk [vmem:[#allocation2 + $0x4] sm:$0xf] %vm604_vm2, %v597_v14  ;;  %v828_v10 = vperm.slane %v820_v41, %v2037_v60  ;;  %v862_v11 = vsel %vm376_vm1, %v2118_v29, %v861_v35  ;;  %v817_v48 = vrot.slane %v804_v15, 4  ;;  %v859_v50 = vrot.slane %v2118_v29, 4 }
 0x176   : > { %610 = vst.msk [vmem:[#allocation2 + $0x14] sm:$0xf] %vm604_vm2, %v601_v36  ;;  %v835_v7 = vrot.slane %v816_v38, 4  ;;  %v870_v24 = vperm.slane %v862_v11, %v2037_v60  ;;  %v874_v32 = vsel %vm376_vm1, %v2113_v25, %v873_v2  ;;  %v806_v9 = vsel %vm376_vm1, %v805_v45, %v2128_v37 }
 0x177   : > { %612 = vst.msk [vmem:[#allocation2 + $0x1c] sm:$0xf] %vm604_vm2, %v603_v33  ;;  %v882_v49 = vperm.slane %v874_v32, %v2037_v60  ;;  %v818_v44 = vsel %vm376_vm1, %v817_v48, %v2121_v31  ;;  %v871_v51 = vrot.slane %v2113_v25, 4  ;;  %v812_v54 = vperm.slane %v806_v9, %v2037_v60 }
 0x178   : > { %v836_v43 = vsel %vm376_vm1, %v828_v10, %v835_v7  ;;  %v889_v17 = vrot.slane %v870_v24, 4  ;;  %v824_v52 = vperm.slane %v818_v44, %v2037_v60  ;;  %v860_v29 = vsel %vm376_vm1, %v859_v50, %v2106_v19 }
 0x179   : > { %v872_v53 = vsel %vm376_vm1, %v871_v51, %v2097_v3  ;;  %v833_v0 = vrot.slane %v828_v10, 4  ;;  %v831_v37 = vrot.slane %v812_v54, 4  ;;  %v866_v31 = vperm.slane %v860_v29, %v2037_v60 }
 0x17a   : > { %v890_v25 = vsel %vm376_vm1, %v882_v49, %v889_v17  ;;  %v897_v46 = vpack.c.bf16 %v836_v43, %v836_v43  ;;  %v887_v56 = vrot.slane %v882_v49, 4  ;;  %v878_v19 = vperm.slane %v872_v53, %v2037_v60 }
 0x17b   : > { %v1453_v57 = vld [vmem:[#allocation2 + $0x8] sm:$0xff]  ;;  %v834_v58 = vsel %vm376_vm1, %v833_v0, %v816_v38  ;;  %v832_v61 = vsel %vm376_vm1, %v824_v52, %v831_v37  ;;  %v885_v39 = vrot.slane %v866_v31, 4  ;;  %v829_v62 = vrot.slane %v824_v52, 4 }
 0x17c   : > { %v1452_v59 = vld [vmem:[#allocation2] sm:$0xff]  ;;  %v952_v3 = vsel %vm917_vm3, %v1453_v57, 0  ;;  %v893_v63 = vpack.c.bf16 %v832_v61, %v832_v61  ;;  %v888_v1 = vsel %vm376_vm1, %v887_v56, %v870_v24  ;;  %v895_v47 = vpack.c.bf16 %v834_v58, %v834_v58 }
 0x17d   : > { %v1454_v8 = vld [vmem:[#allocation2 + $0x10] sm:$0xff]  ;;  %961 = vmatpush.bf16.xpose.msra.mxu3 %v952_v3  ;;  %v922_v42 = vsel %vm917_vm3, %v1452_v59, 0  ;;  %v898_v55 = vpack.c.bf16 %v890_v25, %v890_v25  ;;  %v886_v5 = vsel %vm376_vm1, %v878_v19, %v885_v39  ;;  %v896_v6 = vpack.c.bf16 %v888_v1, %v888_v1 }
 0x17e   : > { %v1455_v4 = vld [vmem:[#allocation2 + $0x18] sm:$0xff]  ;;  %v982_v12 = vsel %vm917_vm3, %v1454_v8, 0  ;;  %931 = vmatpush.bf16.xpose.msra.mxu2 %v922_v42  ;;  %v894_v60 = vpack.c.bf16 %v886_v5, %v886_v5  ;;  %v940_v13 = vunpack.c.l.b16 %v893_v63  ;;  %v830_v16 = vsel %vm376_vm1, %v829_v62, %v812_v54 }
 0x17f   : > { %v1012_v15 = vsel %vm917_vm3, %v1455_v4, 0  ;;  %991 = vmatpush.bf16.xpose.msrb.mxu0 %v982_v12  ;;  %v883_v18 = vrot.slane %v878_v19, 4  ;;  %v970_v21 = vunpack.c.l.b16 %v895_v47  ;;  %v971_v22 = vunpack.c.l.b16 %v896_v6 }
 0x180   : > { %1021 = vmatpush.bf16.xpose.msrb.mxu1 %v1012_v15  ;;  %v941_v20 = vunpack.c.l.b16 %v894_v60  ;;  %v891_v23 = vpack.c.bf16 %v830_v16, %v830_v16  ;;  %v1000_v26 = vunpack.c.l.b16 %v897_v46  ;;  %v1001_v27 = vunpack.c.l.b16 %v898_v55 }
 0x181   : > { %v884_v30 = vsel %vm376_vm1, %v883_v18, %v866_v31  ;;  %v972_v14 = vpack.c.b16 %v971_v22, %v970_v21 }
 0x182   : > { %v942_v33 = vpack.c.b16 %v941_v20, %v940_v13  ;;  %v892_v28 = vpack.c.bf16 %v884_v30, %v884_v30  ;;  %v909_v40 = vunpack.c.l.b16 %v891_v23  ;;  %v1002_v35 = vpack.c.b16 %v1001_v27, %v1000_v26 }
 0x184   : > { %1430 = vmatmul.msk.bf16.vlgmr.msra.gmra.mxu3 %vm917_vm3, %v942_v33  ;;  %v910_v34 = vunpack.c.l.b16 %v892_v28 }
 0x186   : > { %1435 = vmatmul.msk.bf16.vlgmr.msrb.gmra.mxu0 %vm917_vm3, %v972_v14  ;;  %v911_v36 = vpack.c.b16 %v910_v34, %v909_v40 }
 0x187   : > { %1440 = vmatmul.msk.bf16.vlgmr.msrb.gmra.mxu1 %vm917_vm3, %v1002_v35 }
 0x188   : > { %1425 = vmatmul.msk.bf16.vlgmr.msra.gmra.mxu2 %vm917_vm3, %v911_v36 }
 0x203   : > { %v993_v38 = vpop.f32.mrf.mxu0 }
 0x204   : > { %v1041_v41 = vsel %vm1028_vm4, %v993_v38, -inf  ;;  %v1023_v2 = vpop.f32.mrf.mxu1 }
 0x205   : > { %1042 = vmax.xlane.f32.xlu0 %v1041_v41  ;;  %v1047_v44 = vsel %vm1028_vm4, %v1023_v2, -inf }
 0x207   : > { %v963_v10 = vpop.f32.mrf.mxu3 }
 0x208   : > { %v1035_v11 = vsel %vm1028_vm4, %v963_v10, -inf }
 0x209   : > { %1036 = vmax.xlane.f32.xlu2 %v1035_v11 }
 0x20b   : > { %v933_v45 = vpop.f32.mrf.mxu2  ;;  %v995_v51 = vpop.f32.mrf.mxu0 }
 0x20c   : > { %v1029_v48 = vsel %vm1028_vm4, %v933_v45, -inf  ;;  %v1025_v32 = vpop.f32.mrf.mxu1  ;;  %v1044_v43 = vsel %vm1028_vm4, %v995_v51, -inf }
 0x20d   : > { %1030 = vmax.xlane.f32.xlu0 %v1029_v48  ;;  %v1050_v49 = vsel %vm1028_vm4, %v1025_v32, -inf }
 0x20f   : > { %v965_v7 = vpop.f32.mrf.mxu3 }
 0x210   : > { %v1038_v24 = vsel %vm1028_vm4, %v965_v7, -inf }
 0x211   : > { %1039 = vmax.xlane.f32.xlu2 %v1038_v24 }
 0x213   : > { %v935_v50 = vpop.f32.mrf.mxu2 }
 0x214   : > { %v1032_v9 = vsel %vm1028_vm4, %v935_v50, -inf }
 0x215   : > { %1051 = vmax.xlane.f32.xlu0 %v1050_v49  ;;  %1033 = vmax.xlane.f32.xlu1 %v1032_v9 }
 0x219   : > { %1048 = vmax.xlane.f32.xlu2 %v1047_v44 }
 0x21d   : > { %1045 = vmax.xlane.f32.xlu1 %v1044_v43 }
 0x278   : > { %v1043_v17 = vpop.xlane.xlu0 %1042 }
 0x279   : > { %v1057_v54 = vsub.f32 %v993_v38, %v1043_v17 }
 0x27b   : > { %v1069_v52 = vmul.f32 1.442695, %v1057_v54 }
 0x27c   : > { %v1037_v29 = vpop.xlane.xlu2 %1036 }
 0x27d   : > { %1586 = vpow2.f32 %v1069_v52  ;;  %v1055_v53 = vsub.f32 %v963_v10, %v1037_v29 }
 0x27f   : > { %v1065_v0 = vmul.f32 1.442695, %v1055_v53 }
 0x280   : > { %v1031_v37 = vpop.xlane.xlu0 %1030 }
 0x281   : > { %1588 = vpow2.f32 %v1065_v0  ;;  %v1053_v31 = vsub.f32 %v933_v45, %v1031_v37 }
 0x283   : > { %v2282_v57 = vpop.eup %1586  ;;  %v1061_v25 = vmul.f32 1.442695, %v1053_v31 }
 0x284   : > { %v1089_v46 = vsel %vm1028_vm4, %v2282_v57, 0.0  ;;  %v1040_v58 = vpop.xlane.xlu2 %1039 }
 0x285   : > { %1590 = vpow2.f32 %v1061_v25  ;;  %1090 = vadd.xlane.f32.xlu2 %v1089_v46  ;;  %v1056_v56 = vsub.f32 %v965_v7, %v1040_v58 }
 0x287   : > { %v2286_v59 = vpop.eup %1588  ;;  %v1067_v61 = vmul.f32 1.442695, %v1056_v56 }
 0x288   : > { %v1034_v19 = vpop.xlane.xlu1 %1033  ;;  %v1083_v39 = vsel %vm1028_vm4, %v2286_v59, 0.0  ;;  %v1052_v62 = vpop.xlane.xlu0 %1051 }
 0x289   : > { %v1054_v3 = vsub.f32 %v935_v50, %v1034_v19  ;;  %1084 = vadd.xlane.f32.xlu0 %v1083_v39  ;;  %1592 = vpow2.f32 %v1067_v61  ;;  %v1060_v1 = vsub.f32 %v1025_v32, %v1052_v62 }
 0x28b   : > { %v2290_v8 = vpop.eup %1590  ;;  %v1063_v63 = vmul.f32 1.442695, %v1054_v3  ;;  %v1075_v5 = vmul.f32 1.442695, %v1060_v1 }
 0x28c   : > { %v1077_v47 = vsel %vm1028_vm4, %v2290_v8, 0.0  ;;  %v1049_v4 = vpop.xlane.xlu2 %1048 }
 0x28d   : > { %1078 = vadd.xlane.f32.xlu1 %v1077_v47  ;;  %v1059_v42 = vsub.f32 %v1023_v2, %v1049_v4  ;;  %1594 = vpow2.f32 %v1063_v63 }
 0x28f   : > { %v1073_v55 = vmul.f32 1.442695, %v1059_v42  ;;  %v2294_v12 = vpop.eup %1592 }
 0x290   : > { %v1046_v6 = vpop.xlane.xlu1 %1045  ;;  %v1086_v16 = vsel %vm1028_vm4, %v2294_v12, 0.0 }
 0x291   : > { %v1058_v60 = vsub.f32 %v995_v51, %v1046_v6  ;;  %1596 = vpow2.f32 %v1073_v55 }
 0x292   : > { %1598 = vpow2.f32 %v1075_v5 }
 0x293   : > { %v1071_v13 = vmul.f32 1.442695, %v1058_v60  ;;  %v2296_v15 = vpop.eup %1594 }
 0x294   : > { %v1080_v18 = vsel %vm1028_vm4, %v2296_v15, 0.0 }
 0x295   : > { %1600 = vpow2.f32 %v1071_v13  ;;  %1087 = vadd.xlane.f32.xlu1 %v1086_v16  ;;  %1081 = vadd.xlane.f32.xlu2 %v1080_v18 }
 0x297   : > { %v2302_v20 = vpop.eup %1596 }
 0x298   : > { %v2304_v21 = vpop.eup %1598  ;;  %v1095_v23 = vsel %vm1028_vm4, %v2302_v20, 0.0 }
 0x299   : > { %v1098_v27 = vsel %vm1028_vm4, %v2304_v21, 0.0 }
 0x29b   : > { %v2306_v22 = vpop.eup %1600 }
 0x29c   : > { %v1092_v26 = vsel %vm1028_vm4, %v2306_v22, 0.0 }
 0x29d   : > { %1096 = vadd.xlane.f32.xlu1 %v1095_v23  ;;  %1093 = vadd.xlane.f32.xlu0 %v1092_v26 }
 0x29e   : > { %1099 = vadd.xlane.f32.xlu2 %v1098_v27 }
 0x2f8   : > { %v1091_v30 = vpop.xlane.xlu2 %1090 }
 0x2f9   : > { %1602 = vrcp.f32 %v1091_v30  ;;  %v1170_v36 = vand.u32 2147483647, %v1091_v30  ;;  %v1172_v38 = vand.u32 2147483648, %v1091_v30  ;;  %vm1166_vm6 = vweird.f32 %v1091_v30 }
 0x2fb   : > { %vm1171_vm8 = vcmp.eq.f32.partialorder %v1170_v36, 8.507059e+37  ;;  %v1173_v48 = vor.u32 1.1754944e-38, %v1172_v38 }
 0x2fc   : > { %v1085_v33 = vpop.xlane.xlu0 %1084 }
 0x2fd   : > { %1604 = vrcp.f32 %v1085_v33  ;;  %v1140_v7 = vand.u32 2147483647, %v1085_v33  ;;  %v1142_v24 = vand.u32 2147483648, %v1085_v33  ;;  %vm1136_vm11 = vweird.f32 %v1085_v33 }
 0x2ff   : > { %v1603_v28 = vpop.eup %1602  ;;  %vm1141_vm13 = vcmp.eq.f32.partialorder %v1140_v7, 8.507059e+37  ;;  %v1143_v52 = vor.u32 1.1754944e-38, %v1142_v24 }
 0x300   : > { %v1162_v40 = vmul.f32 %v1603_v28, %v1091_v30  ;;  %v1079_v14 = vpop.xlane.xlu1 %1078  ;;  %vm1167_vm5 = vweird.f32 %v1603_v28 }
 0x301   : > { %1606 = vrcp.f32 %v1079_v14  ;;  %vm1168_vm7 = vmor %vm1166_vm6, %vm1167_vm5  ;;  %v1110_v29 = vand.u32 2147483647, %v1079_v14  ;;  %v1112_v53 = vand.u32 2147483648, %v1079_v14  ;;  %vm1106_vm15 = vweird.f32 %v1079_v14 }
 0x302   : > { %v1163_v34 = vsub.f32 1.0, %v1162_v40 }
 0x303   : > { %v1605_v35 = vpop.eup %1604  ;;  %v1113_v56 = vor.u32 1.1754944e-38, %v1112_v53  ;;  %vm1111_vm1 = vcmp.eq.f32.partialorder %v1110_v29, 8.507059e+37 }
 0x304   : > { %v1164_v41 = vmul.f32 %v1603_v28, %v1163_v34  ;;  %v1132_v2 = vmul.f32 %v1605_v35, %v1085_v33  ;;  %vm1137_vm9 = vweird.f32 %v1605_v35 }
 0x305   : > { %vm1138_vm12 = vmor %vm1136_vm11, %vm1137_vm9 }
 0x306   : > { %v1165_v10 = vadd.f32 %v1603_v28, %v1164_v41  ;;  %v1133_v11 = vsub.f32 1.0, %v1132_v2 }
 0x307   : > { %v1607_v45 = vpop.eup %1606 }
 0x308   : > { %v1169_v32 = vsel %vm1168_vm7, %v1603_v28, %v1165_v10  ;;  %v1134_v50 = vmul.f32 %v1605_v35, %v1133_v11  ;;  %v1102_v49 = vmul.f32 %v1607_v45, %v1079_v14  ;;  %v1088_v9 = vpop.xlane.xlu1 %1087  ;;  %v1082_v51 = vpop.xlane.xlu2 %1081  ;;  %vm1107_vm14 = vweird.f32 %v1607_v45 }
 0x309   : > { %v1174_v44 = vsel %vm1171_vm8, %v1173_v48, %v1169_v32  ;;  %1608 = vrcp.f32 %v1088_v9  ;;  %vm1108_vm0 = vmor %vm1106_vm15, %vm1107_vm14  ;;  %v1125_v5 = vand.u32 2147483647, %v1082_v51  ;;  %v1155_v6 = vand.u32 2147483647, %v1088_v9 }
 0x30a   : > { %v1175_v43 = vmul.f32 %v2282_v57, %v1174_v44  ;;  %v1135_v17 = vadd.f32 %v1605_v35, %v1134_v50  ;;  %v1103_v54 = vsub.f32 1.0, %v1102_v49  ;;  %1610 = vrcp.f32 %v1082_v51 }
 0x30b   : > { %v1157_v60 = vand.u32 2147483648, %v1088_v9  ;;  %v1127_v16 = vand.u32 2147483648, %v1082_v51  ;;  %vm1151_vm4 = vweird.f32 %v1088_v9  ;;  %vm1121_vm5 = vweird.f32 %v1082_v51 }
 0x30c   : > { %v1225_v0 = vpack.c.bf16 %v1175_v43, %v1175_v43  ;;  %v1139_v37 = vsel %vm1138_vm12, %v1605_v35, %v1135_v17  ;;  %v1104_v31 = vmul.f32 %v1607_v45, %v1103_v54  ;;  %vm1156_vm7 = vcmp.eq.f32.partialorder %v1155_v6, 8.507059e+37 }
 0x30d   : > { %v1144_v25 = vsel %vm1141_vm13, %v1143_v52, %v1139_v37  ;;  %v1158_v30 = vor.u32 1.1754944e-38, %v1157_v60  ;;  %vm1126_vm9 = vcmp.eq.f32.partialorder %v1125_v5, 8.507059e+37  ;;  %v1128_v28 = vor.u32 1.1754944e-38, %v1127_v16 }
 0x30e   : > { %1234 = vst.msk [vmem:[%s2316_s8 + $0x10] sm:$0xf] %vm1229_vm10, %v1225_v0  ;;  %v1145_v57 = vmul.f32 %v2286_v59, %v1144_v25  ;;  %v1105_v46 = vadd.f32 %v1607_v45, %v1104_v31 }
 0x30f   : > { %v1609_v58 = vpop.eup %1608 }
 0x310   : > { %v1611_v61 = vpop.eup %1610  ;;  %v1223_v19 = vpack.c.bf16 %v1145_v57, %v1145_v57  ;;  %v1109_v39 = vsel %vm1108_vm0, %v1607_v45, %v1105_v46  ;;  %v1147_v62 = vmul.f32 %v1609_v58, %v1088_v9  ;;  %v2321_v3 = vpop.xlane.xlu0 %1093  ;;  %vm1152_vm2 = vweird.f32 %v1609_v58 }
 0x311   : > { %v1114_v63 = vsel %vm1111_vm1, %v1113_v56, %v1109_v39  ;;  %v1117_v1 = vmul.f32 %v1611_v61, %v1082_v51  ;;  %v2323_v47 = vpop.xlane.xlu2 %1099  ;;  %1612 = vrcp.f32 %v2321_v3  ;;  %v2330_v42 = vpop.xlane.xlu1 %1096  ;;  %vm1122_vm3 = vweird.f32 %v1611_v61  ;;  %vm1153_vm6 = vmor %vm1151_vm4, %vm1152_vm2 }
 0x312   : > { %1232 = vst.msk [vmem:[%s2316_s8 + $0x8] sm:$0xf] %vm1229_vm10, %v1223_v19  ;;  %v1115_v59 = vmul.f32 %v2290_v8, %v1114_v63  ;;  %v1148_v4 = vsub.f32 1.0, %v1147_v62  ;;  %1614 = vrcp.f32 %v2323_v47  ;;  %vm1123_vm8 = vmor %vm1121_vm5, %vm1122_vm3  ;;  %vm1211_vm11 = vweird.f32 %v2323_v47 }
 0x313   : > { %v1118_v55 = vsub.f32 1.0, %v1117_v1  ;;  %1616 = vrcp.f32 %v2330_v42  ;;  %v1217_v2 = vand.u32 2147483648, %v2323_v47  ;;  %v1185_v7 = vand.u32 2147483647, %v2321_v3 }
 0x314   : > { %v1221_v13 = vpack.c.bf16 %v1115_v59, %v1115_v59  ;;  %v1149_v18 = vmul.f32 %v1609_v58, %v1148_v4  ;;  %v1187_v24 = vand.u32 2147483648, %v2321_v3  ;;  %v1215_v44 = vand.u32 2147483647, %v2323_v47 }
 0x315   : > { %v1119_v23 = vmul.f32 %v1611_v61, %v1118_v55  ;;  %vm1181_vm14 = vweird.f32 %v2321_v3  ;;  %vm1186_vm0 = vcmp.eq.f32.partialorder %v1185_v7, 8.507059e+37  ;;  %v1202_v52 = vand.u32 2147483648, %v2330_v42 }
 0x316   : > { %1230 = vst.msk [vmem:[%s2316_s8] sm:$0xf] %vm1229_vm10, %v1221_v13  ;;  %v1150_v8 = vadd.f32 %v1609_v58, %v1149_v18  ;;  %v1188_v54 = vor.u32 1.1754944e-38, %v1187_v24  ;;  %v1200_v0 = vand.u32 2147483647, %v2330_v42  ;;  %vm1216_vm3 = vcmp.eq.f32.partialorder %v1215_v44, 8.507059e+37 }
 0x317   : > { %v1613_v26 = vpop.eup %1612  ;;  %v1120_v27 = vadd.f32 %v1611_v61, %v1119_v23  ;;  %vm1196_vm4 = vweird.f32 %v2330_v42  ;;  %v1203_v56 = vor.u32 1.1754944e-38, %v1202_v52 }
 0x318   : > { %v1615_v33 = vpop.eup %1614  ;;  %v1154_v40 = vsel %vm1153_vm6, %v1609_v58, %v1150_v8  ;;  %v1177_v14 = vmul.f32 %v1613_v26, %v2321_v3  ;;  %vm1182_vm12 = vweird.f32 %v1613_v26  ;;  %vm1201_vm6 = vcmp.eq.f32.partialorder %v1200_v0, 8.507059e+37 }
 0x319   : > { %v1124_v34 = vsel %vm1123_vm8, %v1611_v61, %v1120_v27  ;;  %v1159_v35 = vsel %vm1156_vm7, %v1158_v30, %v1154_v40  ;;  %v1207_v36 = vmul.f32 %v1615_v33, %v2323_v47  ;;  %v1617_v11 = vpop.eup %1616  ;;  %vm1212_vm13 = vweird.f32 %v1615_v33  ;;  %vm1183_vm15 = vmor %vm1181_vm14, %vm1182_vm12 }
 0x31a   : > { %v1129_v38 = vsel %vm1126_vm9, %v1128_v28, %v1124_v34  ;;  %v1160_v41 = vmul.f32 %v2294_v12, %v1159_v35  ;;  %v1178_v10 = vsub.f32 1.0, %v1177_v14  ;;  %v1192_v49 = vmul.f32 %v1617_v11, %v2330_v42  ;;  %vm1213_vm1 = vmor %vm1211_vm11, %vm1212_vm13 }
 0x31b   : > { %v1130_v45 = vmul.f32 %v2296_v15, %v1129_v38  ;;  %v1208_v48 = vsub.f32 1.0, %v1207_v36  ;;  %v1218_v15 = vor.u32 1.1754944e-38, %v1217_v2  ;;  %vm1197_vm2 = vweird.f32 %v1617_v11 }
 0x31c   : > { %v1224_v32 = vpack.c.bf16 %v1160_v41, %v1160_v41  ;;  %v1179_v50 = vmul.f32 %v1613_v26, %v1178_v10  ;;  %v1193_v43 = vsub.f32 1.0, %v1192_v49  ;;  %vm1198_vm5 = vmor %vm1196_vm4, %vm1197_vm2 }
 0x31d   : > { %v1222_v12 = vpack.c.bf16 %v1130_v45, %v1130_v45  ;;  %v1209_v9 = vmul.f32 %v1615_v33, %v1208_v48 }
 0x31e   : > { %1233 = vst.msk [vmem:[%s2316_s8 + $0xc] sm:$0xf] %vm1229_vm10, %v1224_v32  ;;  %v1180_v51 = vadd.f32 %v1613_v26, %v1179_v50  ;;  %v1194_v53 = vmul.f32 %v1617_v11, %v1193_v43 }
 0x31f   : > { %1231 = vst.msk [vmem:[%s2316_s8 + $0x4] sm:$0xf] %vm1229_vm10, %v1222_v12  ;;  %v1210_v17 = vadd.f32 %v1615_v33, %v1209_v9 }
 0x320   : > { %v1184_v29 = vsel %vm1183_vm15, %v1613_v26, %v1180_v51  ;;  %v1195_v46 = vadd.f32 %v1617_v11, %v1194_v53 }
 0x321   : > { %v1214_v37 = vsel %vm1213_vm1, %v1615_v33, %v1210_v17  ;;  %v1189_v31 = vsel %vm1186_vm0, %v1188_v54, %v1184_v29 }
 0x322   : > { %v1219_v25 = vsel %vm1216_vm3, %v1218_v15, %v1214_v37  ;;  %v1190_v57 = vmul.f32 %v2306_v22, %v1189_v31  ;;  %v1199_v19 = vsel %vm1198_vm5, %v1617_v11, %v1195_v46 }
 0x323   : > { %v1220_v58 = vmul.f32 %v2304_v21, %v1219_v25  ;;  %v1204_v62 = vsel %vm1201_vm6, %v1203_v56, %v1199_v19 }
 0x324   : > { %v1226_v61 = vpack.c.bf16 %v1190_v57, %v1190_v57  ;;  %v1205_v22 = vmul.f32 %v2302_v20, %v1204_v62 }
 0x325   : > { %v1228_v39 = vpack.c.bf16 %v1220_v58, %v1220_v58 }
 0x326   : > { %1235 = vst.msk [vmem:[%s2316_s8 + $0x14] sm:$0xf] %vm1229_vm10, %v1226_v61  ;;  %v1227_v21 = vpack.c.bf16 %v1205_v22, %v1205_v22 }
 0x327   : > { %1237 = vst.msk [vmem:[%s2316_s8 + $0x1c] sm:$0xf] %vm1229_vm10, %v1228_v39 }
 0x328   : > { %1236 = vst.msk [vmem:[%s2316_s8 + $0x18] sm:$0xf] %vm1229_vm10, %v1227_v21 }
 0x329   : > { %1765 = shalt.err (!%p1762_p0)
}
 0x32a   : > { %s1845_s14 = smov 64   ;;  %s1846_s28 = smov 4  }
 0x32b   : > { %1469 = dma.vmem_to_hbm [thread:$0]  (%p1951_p7), %s1254_s13, 512, %s1256_s5, %s1239_s6, %s1845_s14, %s1845_s14, %s1846_s28  }
 0x32c PF: > { %s1270_s21 = sand.u32 1, %s1812_s15   ;;  %p1486_p3 = pnand %p1390_p11, %p1917_p6 }
 0x32d   : > { %s1271_s23 = scalar_lea.sflag [#allocation5], %s1270_s21 }
 0x32e   : > { %p1487_p5 = pneg %p1486_p3 }
 0x330   : > { %1807 = dma.done.wait (%p1487_p5), %s1271_s23, 512  }
 0x331   : > { %1809 = vsyncadd (%p1487_p5), %s1271_s23, 4294966784  ;;  %s24_s20 = sadd.s32 1, %s1832_s20   ;;  %s2421_s18 = sld [smem:[#allocation17_spill]] }
 0x332   : > { %p21_p9 = scmp.ge.s32.totalorder %s24_s20, 4   ;;  %s2422_s19 = sld [smem:[#allocation18_spill]] }
 0x333   : > { %s2423_s15 = smov %s1816_s16  ;;  %s2424_s16 = smov %s1820_s17 }
 0x334   : > { %s2425_s17 = smov %s1960_s30  ;;  %23 = sbr.rel (!%p21_p9) target bundleno = 12 (0xc), region = 106 }
 0x339   :  { %1277 = vsyncpa [#allocation4], 1 }
 0x33a   :  { %1279 = vsyncpa [#allocation4 + $0x1], 1 }
 0x33b   :  { %1280 = vsyncpa [#allocation7], 1 }
 0x33c   :  { %1282 = vsyncpa [#allocation7 + $0x1], 1 }
 0x33d   :  { %1283 = vsyncpa [#allocation10], 1 }
 0x33e   :  { %1284 = vsyncpa [#allocation5], 1 }
 0x33f   :  { %1286 = vsyncpa [#allocation5 + $0x1], 1 }

</bundles_post_ra>
